<compile_context>
chip_gen: v7x
topology: tpu7x:2x2x1
jax: 0.10.0
libtpu: 0.0.40
codegen_flags: <defaults>
</compile_context>

<pallas_src>
import functools
import math

import jax
import jax.numpy as jnp
from jax.experimental import pallas as pl
from jax.experimental.pallas import tpu as pltpu


def _cdiv(a, b):
    return -(-a // b)


def _round_up(x, m):
    return ((x + m - 1) // m) * m


@functools.lru_cache(maxsize=None)
def _vmem_budget_default():
    """~75% of this generation's per-core VMEM, with a conservative fallback."""
    try:
        cap = int(pltpu.get_tpu_info().vmem_capacity_bytes)
    except Exception:  # non-TPU trace / older jax: assume v7x-sized 64 MiB
        cap = 64 * 1024 * 1024
    cap = min(cap, 128 * 1024 * 1024)
    return max(16 * 1024 * 1024, (cap * 3) // 4)


def _choose_tiles(bsz, nk_in, nk_out, itemsize, sub, tb_max, budget):
    """Pick (row tile tb, #row tiles, weight-column tile tn, #column tiles)."""
    # Candidate column tiles: whole nk_out first, then lane-aligned fractions.
    tn_cands = [nk_out] + [t for t in (8192, 4096, 2048, 1024, 512, 256, 128)
                           if t < nk_out]
    bsz_r = _round_up(bsz, sub)
    tb_target = min(bsz_r, 512)  # row tile we would like to be able to afford

    def fits(tn, tb):
        # Double-buffered A block + double-buffered v-in / out row tiles.
        return (2 * nk_in * tn + 2 * tb * (nk_in + tn)) * itemsize <= budget

    tn = None
    for cand in tn_cands:               # biggest tn that still allows a decent tb
        if fits(cand, tb_target):
            tn = cand
            break
    if tn is None:                      # otherwise biggest tn that fits at all
        for cand in tn_cands:
            if fits(cand, sub):
                tn = cand
                break
    if tn is None:
        tn = tn_cands[-1]
        # TODO(synk): if even (nk_in, 128) blocks overflow VMEM, additionally
        # tile the nk_in contraction axis with an f32 accumulator scratch and
        # pl.when init/finalize; not needed at realistic VecLinear sizes.

    avail = budget - 2 * nk_in * tn * itemsize
    per_row = 2 * (nk_in + tn) * itemsize
    tb = (avail // per_row) // sub * sub if avail > 0 else 0
    tb = max(sub, min(tb, max(sub, (tb_max // sub) * sub), bsz_r))

    # Guarantee >= 2 row tiles whenever the batch allows it so v7x's second
    # TensorCore gets half the work (near-free on single-core v5e/v6e).
    if bsz_r >= 2 * sub:
        tb = min(tb, _round_up(_cdiv(bsz_r, 2), sub))

    n_b = _cdiv(bsz, tb)
    tb = min(tb, _round_up(_cdiv(bsz_r, n_b), sub))   # balance the row tiles
    n_b = _cdiv(bsz, tb)
    n_n = _cdiv(nk_out, tn)
    return tb, n_b, tn, n_n


def _vec_linear_kernel(a_ref, v_ref, o_ref):
    # (TB, nk_in) @ (nk_in, TN) -> (TB, TN) on the MXU, f32 accumulation.
    o_ref[...] = jnp.dot(
        v_ref[...], a_ref[...], preferred_element_type=jnp.float32
    ).astype(o_ref.dtype)


def expand_vec_weight(W, k, dtype=None):
    """A = kron(W.T, I_k): (dim_in*k, dim_out*k).

    For repeated forward passes with a fixed weight, call this once and reuse
    the result with `vec_linear_expanded` to keep the kron off the step path.
    """
    dtype = W.dtype if dtype is None else dtype
    return jnp.kron(W.T.astype(dtype), jnp.eye(k, dtype=dtype))


@functools.partial(jax.jit, static_argnames=("tb_max", "vmem_budget_bytes"))
def vec_linear_expanded(A, v, *, tb_max=4096, vmem_budget_bytes=None):
    """out = einsum('oi, ...ik -> ...ok', W, v) given A = kron(W.T, I_k)."""
    *lead, dim_in, k = v.shape
    nk_in, nk_out = A.shape
    assert nk_in == dim_in * k, f"A/v mismatch: {nk_in} vs {dim_in}*{k}"
    assert nk_out % k == 0
    dim_out = nk_out // k

    bsz = math.prod(lead) if lead else 1
    itemsize = jnp.dtype(v.dtype).itemsize
    sub = {1: 32, 2: 16, 4: 8}.get(itemsize, 8)   # dtype-aware sublane multiple

    budget = int(vmem_budget_bytes) if vmem_budget_bytes is not None \
        else _vmem_budget_default()
    tb, n_b, tn, n_n = _choose_tiles(bsz, nk_in, nk_out, itemsize, sub,
                                     tb_max, budget)

    v_flat = v.reshape(bsz, nk_in)   # row-major reshape: free, no HBM copy

    cost = pl.CostEstimate(
        flops=2 * bsz * nk_in * nk_out,
        bytes_accessed=itemsize * (n_n * bsz * nk_in + bsz * nk_out
                                   + nk_in * nk_out),
        transcendentals=0,
    )

    out_flat = pl.pallas_call(
        _vec_linear_kernel,
        out_shape=jax.ShapeDtypeStruct((bsz, nk_out), v.dtype),
        grid=(n_n, n_b),   # rows innermost -> A column-block stays resident
        in_specs=[
            pl.BlockSpec((nk_in, tn), lambda j, i: (0, j)),   # A (usually whole)
            pl.BlockSpec((tb, nk_in), lambda j, i: (i, 0)),   # v: streamed rows
        ],
        out_specs=pl.BlockSpec((tb, tn), lambda j, i: (i, j)),
        compiler_params=pltpu.CompilerParams(
            dimension_semantics=("parallel", "parallel"),     # megacore on v7x
            vmem_limit_bytes=int(min(max(budget, 32 * 1024 * 1024),
                                     100 * 1024 * 1024)),
        ),
        cost_estimate=cost,
    )(A.astype(v.dtype), v_flat)

    return out_flat.reshape(*lead, dim_out, k)


@functools.partial(jax.jit, static_argnames=("tb_max", "vmem_budget_bytes"))
def vec_linear(W, v, *, tb_max=4096, vmem_budget_bytes=None):
    """out = einsum('oi, ...ik -> ...ok', W, v) via a Pallas TPU kernel."""
    dim_out, dim_in = W.shape
    assert v.shape[-2] == dim_in, f"dim_in mismatch: {v.shape[-2]} vs {dim_in}"
    A = expand_vec_weight(W, v.shape[-1], v.dtype)
    return vec_linear_expanded(A, v, tb_max=tb_max,
                               vmem_budget_bytes=vmem_budget_bytes)


if __name__ == "__main__":
    key = jax.random.PRNGKey(0)
    k_w, k_v = jax.random.split(key)

    dim_in, dim_out = 32, 64
    batch, seq, kdim = 2, 8, 3          # v: (..., dim_in, k) with ... = (batch, seq)

    # Deterministic init matching VecLinear.self_init: normal_(std=fan_in**-0.5).
    W = jax.random.normal(k_w, (dim_out, dim_in), dtype=jnp.float32) * (dim_in ** -0.5)
    v = jax.random.normal(k_v, (batch, seq, dim_in, kdim), dtype=jnp.float32)

    ref = jnp.einsum("oi,...ik->...ok", W, v)

    out = jax.block_until_ready(vec_linear(W, v))
    assert out.shape == (batch, seq, dim_out, kdim)
    assert jnp.allclose(out, ref, atol=1e-5, rtol=1e-5)

    # Non-divisible batch: exercises boundary-block masking (no jnp.pad / slice).
    v_odd = v[:, :5]
    ref_odd = jnp.einsum("oi,...ik->...ok", W, v_odd)
    out_odd = jax.block_until_ready(vec_linear(W, v_odd))
    assert jnp.allclose(out_odd, ref_odd, atol=1e-5, rtol=1e-5)

    # Column-tiled weight fallback: force a tiny VMEM budget so tn < dim_out*k.
    out_nt = jax.block_until_ready(vec_linear(W, v, vmem_budget_bytes=150_000))
    assert jnp.allclose(out_nt, ref, atol=1e-5, rtol=1e-5)

    # bf16 inputs: exercises the 16-sublane rounding path, f32 MXU accumulation.
    out_bf = jax.block_until_ready(
        vec_linear(W.astype(jnp.bfloat16), v.astype(jnp.bfloat16)))
    assert jnp.allclose(out_bf.astype(jnp.float32), ref, atol=1e-1, rtol=1e-1)

    print("KERNEL_OK")
</pallas_src>

<mosaic_0001>
module attributes {stable_mosaic.version = 11 : i64} {
  func.func @_vec_linear_kernel(%arg0: i32, %arg1: i32, %arg2: memref<96x192xf32, #tpu.memory_space<vmem>>, %arg3: memref<8x96xf32, #tpu.memory_space<vmem>>, %arg4: memref<8x192xf32, #tpu.memory_space<vmem>>) attributes {dimension_semantics = [#tpu.dimension_semantics<parallel>, #tpu.dimension_semantics<parallel>], iteration_bounds = array<i64: 1, 2>, scalar_prefetch = 0 : i64, scratch_operands = 0 : i64, tpu.core_type = #tpu.core_type<tc>, window_params = [{transform_indices = @transform_0, window_bounds = array<i64: 96, 192>}, {transform_indices = @transform_1, window_bounds = array<i64: 8, 96>}, {transform_indices = @transform_2, window_bounds = array<i64: 8, 192>}]} {
    %c0 = arith.constant 0 : index
    %c0_0 = arith.constant 0 : index
    %0 = vector.load %arg3[%c0, %c0_0] : memref<8x96xf32, #tpu.memory_space<vmem>>, vector<8x96xf32>
    %c0_1 = arith.constant 0 : index
    %c0_2 = arith.constant 0 : index
    %1 = vector.load %arg2[%c0_1, %c0_2] : memref<96x192xf32, #tpu.memory_space<vmem>>, vector<96x192xf32>
    %cst = arith.constant dense<0.000000e+00> : vector<8x192xf32>
    %2 = tpu.matmul %0, %1, %cst {dimension_numbers = #tpu.dot_dimension_numbers<[1], [0], [0], [1], [0, 0, 1, 1], [], []>} : vector<8x96xf32>, vector<96x192xf32>, vector<8x192xf32> -> vector<8x192xf32>
    %c0_3 = arith.constant 0 : index
    %c0_4 = arith.constant 0 : index
    %3 = vector.load %arg4[%c0_3, %c0_4] : memref<8x192xf32, #tpu.memory_space<vmem>>, vector<8x192xf32>
    tpu.vector_store %arg4[%c0_3, %c0_4], %2 {strides = array<i32>} : memref<8x192xf32, #tpu.memory_space<vmem>>, vector<8x192xf32>,
    return
  }
  func.func @transform_0(%arg0: i32, %arg1: i32) -> (i32, i32) {
    %c0_i32 = arith.constant 0 : i32
    %c0_i32_0 = arith.constant 0 : i32
    return %c0_i32, %arg0 : i32, i32
  }
  func.func @transform_1(%arg0: i32, %arg1: i32) -> (i32, i32) {
    %c0_i32 = arith.constant 0 : i32
    %c0_i32_0 = arith.constant 0 : i32
    return %arg1, %c0_i32 : i32, i32
  }
  func.func @transform_2(%arg0: i32, %arg1: i32) -> (i32, i32) {
    %c0_i32 = arith.constant 0 : i32
    return %arg1, %arg0 : i32, i32
  }
}

</mosaic_0001>

<bundles_post_ra>
// kernel: vec_linear_expanded.1
= control target key start
LH: loop header
LB: loop body
LE: loop exit
PB: predicated region body
PF: predicated region fallthrough
CT: control target
= control target key end

     0   :  { %s487_s9 = smov 0   ;;  %s489_s10 = smov 0   ;;  %s596_s0 = inlined_call_operand.vmem [shape: f32[96,192], index: 0, kind: input, shape index: {}]   ;;  %s597_s1 = inlined_call_operand.vmem [shape: f32[16,96], index: 1, kind: input, shape index: {}]   ;;  %s598_s2 = inlined_call_operand.vmem [shape: f32[16,192], index: 2, kind: output, shape index: {}]  }
   0x1   :  { %s491_s11 = smov 0  }
   0x2 LB: > { %s21_s12 = sadd.s32 1, %s465_s10  ;;  %p390_p0 = scmp.ge.s32.totalorder %s469_s11, 1  ;;  %s469_s11 = sphi %s491_s11, %s12_s11   ;;  %s465_s10 = sphi %s489_s10, %s600_s10   ;;  %s461_s9 = sphi %s487_s9, %s599_s9  }
   0x3   : > { %p22_p1 = scmp.ge.s32.totalorder %s21_s12, 2  ;;  %p136_p2 = scmp.lt.s32.totalorder %s469_s11, 3 }
   0x5   : > { %s602_s12 = smov (%p22_p1, %s21_s12), 0  ;;  %p137_p3 = pnand %p390_p0, %p136_p2 }
   0x6   : > { %v188_v0 = vld [vmem:[%s596_s0 + $0x8] sm:$0xff] (!%p137_p3)  ;;  %v190_v1 = vld [vmem:[%s596_s0 + $0x18] sm:$0xff] (!%p137_p3)  ;;  %v187_v2 = vld [vmem:[%s596_s0] sm:$0xff] (!%p137_p3)  ;;  %v471_v7 = vmov (!%p137_p3), 0.0   ;;  %p172_p4 = scmp.lt.s32.totalorder (!%p137_p3), %s461_s9, 1  ;;  %vm211_vm0 = vcmask (!%p137_p3), 785408  }
   0x7   : > { %140 = sbr.rel (%p137_p3) target bundleno = 247 (0xf7), region = 28  ;;  %v398_v3 = vpack.c.bf16 (!%p137_p3), %v190_v1, %v188_v0  ;;  %v189_v4 = vld [vmem:[%s596_s0 + $0x10] sm:$0xff] (!%p137_p3)  ;;  %v192_v5 = vld [vmem:[%s596_s0 + $0x28] sm:$0xff] (!%p137_p3)  ;;  %v194_v6 = vld [vmem:[%s596_s0 + $0x38] sm:$0xff] (!%p137_p3)  ;;  %279 = vmatprep.mubr.f32.mxu0 (!%p137_p3), %v471_v7  ;;  %vm287_vm1 = vcmask (!%p137_p3), 523264  }
   0x8   : > { %v400_v8 = vpack.c.bf16 (!%p137_p3), %v189_v4, %v187_v2  ;;  %v402_v9 = vpack.c.bf16 (!%p137_p3), %v194_v6, %v192_v5  ;;  %v191_v10 = vld [vmem:[%s596_s0 + $0x20] sm:$0xff] (!%p137_p3)  ;;  %v193_v11 = vld [vmem:[%s596_s0 + $0x30] sm:$0xff] (!%p137_p3)  ;;  %v196_v12 = vld [vmem:[%s596_s0 + $0x48] sm:$0xff] (!%p137_p3) }
   0x9   : > { %399 = vmatprep.subr.bf16.mxu0 (!%p137_p3), %v398_v3  ;;  %v198_v13 = vld [vmem:[%s596_s0 + $0x58] sm:$0xff] (!%p137_p3)  ;;  %v404_v14 = vpack.c.bf16 (!%p137_p3), %v193_v11, %v191_v10  ;;  %v195_v16 = vld [vmem:[%s596_s0 + $0x40] sm:$0xff] (!%p137_p3)  ;;  %v197_v17 = vld [vmem:[%s596_s0 + $0x50] sm:$0xff] (!%p137_p3) }
   0xa   : > { %401 = vmatpush1.bf16.msra.mxu0 (!%p137_p3), %v400_v8  ;;  %v406_v15 = vpack.c.bf16 (!%p137_p3), %v198_v13, %v196_v12  ;;  %v200_v18 = vld [vmem:[%s596_s0 + $0x68] sm:$0xff] (!%p137_p3)  ;;  %v202_v19 = vld [vmem:[%s596_s0 + $0x78] sm:$0xff] (!%p137_p3)  ;;  %v408_v20 = vpack.c.bf16 (!%p137_p3), %v197_v17, %v195_v16  ;;  %v199_v22 = vld [vmem:[%s596_s0 + $0x60] sm:$0xff] (!%p137_p3) }
   0xb   : > { %403 = vmatprep.subr.bf16.mxu0 (!%p137_p3), %v402_v9  ;;  %v410_v21 = vpack.c.bf16 (!%p137_p3), %v202_v19, %v200_v18  ;;  %v201_v23 = vld [vmem:[%s596_s0 + $0x70] sm:$0xff] (!%p137_p3)  ;;  %v204_v24 = vld [vmem:[%s596_s0 + $0x88] sm:$0xff] (!%p137_p3)  ;;  %v206_v25 = vld [vmem:[%s596_s0 + $0x98] sm:$0xff] (!%p137_p3) }
   0xc   : > { %v412_v26 = vpack.c.bf16 (!%p137_p3), %v201_v23, %v199_v22  ;;  %v414_v27 = vpack.c.bf16 (!%p137_p3), %v206_v25, %v204_v24  ;;  %v203_v28 = vld [vmem:[%s596_s0 + $0x80] sm:$0xff] (!%p137_p3)  ;;  %v205_v29 = vld [vmem:[%s596_s0 + $0x90] sm:$0xff] (!%p137_p3)  ;;  %v208_v30 = vld [vmem:[%s596_s0 + $0xa8] sm:$0xff] (!%p137_p3) }
   0xd   : > { %v210_v31 = vld [vmem:[%s596_s0 + $0xb8] sm:$0xff] (!%p137_p3)  ;;  %v416_v32 = vpack.c.bf16 (!%p137_p3), %v205_v29, %v203_v28  ;;  %v207_v34 = vld [vmem:[%s596_s0 + $0xa0] sm:$0xff] (!%p137_p3)  ;;  %v209_v35 = vld [vmem:[%s596_s0 + $0xb0] sm:$0xff] (!%p137_p3) }
   0xe   : > { %405 = vmatpush1.bf16.msra.mxu0 %v404_v14  ;;  %s604_s9 = smov (!%p172_p4, %s461_s9), 1  ;;  %v418_v33 = vpack.c.bf16 %v210_v31, %v208_v30  ;;  %v420_v36 = vpack.c.bf16 %v209_v35, %v207_v34 }
   0xf   : > { %407 = vmatprep.subr.bf16.mxu0 %v406_v15  ;;  %s391_s13 = sshll.u32 %s604_s9, 3  ;;  %s397_s17 = sshll.u32 %s604_s9, 4 }
  0x10   : > { %s175_s16 = scalar_lea.vmem %s597_s1, %s391_s13  ;;  %s184_s20 = scalar_lea.vmem %s598_s2, %s397_s17 }
  0x11   : > { %v186_v37 = vld [vmem:[%s175_s16] sm:$0xff] }
  0x12   : > { %409 = vmatpush1.bf16.msra.mxu0 %v408_v20 }
  0x13   : > { %411 = vmatprep.subr.bf16.mxu0 %v410_v21 }
  0x16   : > { %413 = vmatpush1.bf16.msra.mxu0 %v412_v26 }
  0x17   : > { %415 = vmatprep.subr.bf16.mxu0 %v414_v27 }
  0x1a   : > { %417 = vmatpush1.bf16.msra.mxu0 %v416_v32 }
  0x1b   : > { %419 = vmatprep.subr.bf16.mxu0 %v418_v33 }
  0x1e   : > { %421 = vmatpush1.bf16.msra.mxu0 %v420_v36 }
  0x21   : > { %394 = vmatmul.mubr.msk.f32.vlgmr.msra.gmra.mrb[0].mxu0 %vm211_vm0, %v186_v37 }
  0xf4   : > { %v281_v38 = vpop.f32.mrb[0].mxu0 }
  0xf5   : > { %286 = vst [vmem:[%s184_s20] sm:$0xff] %v281_v38  ;;  %v283_v39 = vpop.f32.mrb[1].mxu0 }
  0xf6   : > { %288 = vst.msk [vmem:[%s184_s20 + $0x8] sm:$0xff] %vm287_vm1, %v283_v39 }
  0xf7 PF: > { %s12_s11 = sadd.s32 1, %s469_s11   ;;  %s599_s9 = smov %s465_s10 }
  0xf8   : > { %p9_p5 = scmp.ge.s32.totalorder %s12_s11, 4   ;;  %s600_s10 = smov %s602_s12 }
  0xfa   :  { %11 = sbr.rel (!%p9_p5) target bundleno = 2 (0x2), region = 61 }

</bundles_post_ra>
